<compile_context>
chip_gen: v6e
topology: v6e:2x2x1
jax: 0.10.0
libtpu: 0.0.40
codegen_flags: <defaults>
</compile_context>

<pallas_src>
import jax
import jax.numpy as jnp
from jax.experimental import pallas as pl
from jax.experimental.pallas import tpu as pltpu


def qnet_kernel(sT_ref, aT_ref, w1s_ref, w1a_ref, b1_ref, w2_ref, b2_ref, o_ref):
    # sT: (ds, TB), aT: (da, TB)   -- feature-major, batch on lanes
    # w1s: (H, ds), w1a: (H, da)   -- torch-native (out, in) layout, split on in
    # b1:  (H, 1),  w2: (H, 1),    b2: (1,) in SMEM
    # o:   (1, TB)                 -- lane-dense output row
    hT = (jnp.dot(w1s_ref[...], sT_ref[...], preferred_element_type=jnp.float32)
          + jnp.dot(w1a_ref[...], aT_ref[...], preferred_element_type=jnp.float32)
          + b1_ref[...])                                   # (H, TB)
    hT = jnp.maximum(hT, 0.0)                              # ReLU on the VPU
    # H -> 1 projection: VPU multiply + sublane reduce -> (1, TB) lane-dense,
    # no relayout needed on the way to the (unmasked) vector store.
    q = jnp.sum(hT * w2_ref[...], axis=0, keepdims=True) + b2_ref[0]
    o_ref[...] = q.astype(o_ref.dtype)


def _pick_batch_tile(B, max_tile=8192, min_steps=4):
    """Lane-dense batch tile: multiple of 128, >= min_steps grid steps when the
    batch is large (keeps both v7x TCs busy and the pipeline overlapped), capped
    so each tile stays a few MiB of VMEM."""
    if B <= 256:
        return B                              # single full-extent block
    tb = min(max_tile, pl.cdiv(B, min_steps))
    tb = max(128, (tb // 128) * 128)
    return min(tb, B)


def qnet_forward_t(sT, aT, w1, b1, w2, b2, *, batch_tile=None):
    """Feature-major QNet forward.

    sT: (ds, B), aT: (da, B) with ds + da == 5 (batch on the lane axis).
    w1: (H, 5) torch-native (out_features, in_features), b1: (H,),
    w2: (1, H) torch-native, b2: (1,).
    Returns (B, 1) float32.
    """
    ds, B = sT.shape
    da = aT.shape[0]
    H = w1.shape[0]

    # Split W1 along its input axis so concat([s, a]) never materializes:
    #   W1 @ concat([s, a])^T == W1[:, :ds] @ s^T + W1[:, ds:] @ a^T
    w1 = w1.astype(jnp.float32)
    w1s, w1a = w1[:, :ds], w1[:, ds:]                  # (H, ds), (H, da)
    b1_col = b1.reshape(H, 1).astype(jnp.float32)      # (H, 1)
    w2_col = w2.reshape(H, 1).astype(jnp.float32)      # (H, 1)
    b2_s = b2.reshape(1).astype(jnp.float32)           # (1,) scalar via SMEM

    # Batch tile: full-extent when small; otherwise a multiple of 128 so the
    # (1, tb) output block and (f, tb) input blocks satisfy lane divisibility
    # and stores remain unmasked.
    if batch_tile is None:
        tb = _pick_batch_tile(B)
    elif B <= batch_tile:
        tb = B
    else:
        tb = max(128, (min(batch_tile, B) // 128) * 128)
    grid = (pl.cdiv(B, tb),)

    cost = pl.CostEstimate(
        flops=2 * B * (ds + da) * H + 3 * B * H,
        transcendentals=0,
        bytes_accessed=4 * (B * (ds + da) + B + (ds + da) * H + 2 * H + 1),
    )

    out_row = pl.pallas_call(
        qnet_kernel,
        out_shape=jax.ShapeDtypeStruct((1, B), jnp.float32),
        grid=grid,
        in_specs=[
            pl.BlockSpec((ds, tb), lambda i: (0, i)),    # s^T tile (lane-dense)
            pl.BlockSpec((da, tb), lambda i: (0, i)),    # a^T tile (lane-dense)
            pl.BlockSpec((H, ds), lambda i: (0, 0)),     # W1[:, :ds] (resident)
            pl.BlockSpec((H, da), lambda i: (0, 0)),     # W1[:, ds:] (resident)
            pl.BlockSpec((H, 1), lambda i: (0, 0)),      # b1 column  (resident)
            pl.BlockSpec((H, 1), lambda i: (0, 0)),      # w2 column  (resident)
            pl.BlockSpec(memory_space=pltpu.MemorySpace.SMEM),   # b2 scalar
        ],
        out_specs=pl.BlockSpec((1, tb), lambda i: (0, i)),        # lane-dense
        compiler_params=pltpu.CompilerParams(
            dimension_semantics=("parallel",)),
        cost_estimate=cost,
    )(sT, aT, w1s, w1a, b1_col, w2_col, b2_s)

    # (1, B) -> (B, 1): same flat layout, free re-view.
    return out_row.reshape(B, 1)


def qnet_forward(s, a, w1, b1, w2, b2, *, batch_tile=None):
    """Batch-major convenience wrapper (s: (B, ds), a: (B, da)).

    Transposes to feature-major before the kernel. If the producer can emit
    (features, batch) activations directly, call qnet_forward_t and skip the
    (tiny) wrapper transposes.
    """
    return qnet_forward_t(s.T, a.T, w1, b1, w2, b2, batch_tile=batch_tile)


def init_params(key, hidden_dim=64):
    """Deterministic synthetic init mimicking torch.nn.Linear's uniform init,
    stored in torch-native (out_features, in_features) layout."""
    k1, k2, k3, k4 = jax.random.split(key, 4)
    in1, in2 = 5, hidden_dim
    bound1 = 1.0 / jnp.sqrt(in1)
    bound2 = 1.0 / jnp.sqrt(in2)
    w1 = jax.random.uniform(k1, (hidden_dim, in1), jnp.float32, -bound1, bound1)
    b1 = jax.random.uniform(k2, (hidden_dim,), jnp.float32, -bound1, bound1)
    w2 = jax.random.uniform(k3, (1, hidden_dim), jnp.float32, -bound2, bound2)
    b2 = jax.random.uniform(k4, (1,), jnp.float32, -bound2, bound2)
    return w1, b1, w2, b2


def _reference(s, a, w1, b1, w2, b2):
    x = jnp.concatenate([s, a], axis=-1)
    h = jnp.maximum(x @ w1.T + b1, 0.0)
    return h @ w2.T + b2


if __name__ == "__main__":
    key = jax.random.PRNGKey(0)
    k_s, k_a, k_p, k_s2, k_a2 = jax.random.split(key, 5)

    state_dim, action_dim = 3, 2      # concat -> 5 features, matches Linear(5, H)
    hidden_dim = 64
    w1, b1, w2, b2 = init_params(k_p, hidden_dim)

    # Small demo batch (single full-extent block).
    batch = 8
    s = jax.random.normal(k_s, (batch, state_dim), jnp.float32)
    a = jax.random.normal(k_a, (batch, action_dim), jnp.float32)
    q = jax.block_until_ready(qnet_forward(s, a, w1, b1, w2, b2))
    ref = _reference(s, a, w1, b1, w2, b2)
    assert q.shape == (batch, 1)
    assert jnp.allclose(q, ref, atol=1e-4, rtol=1e-4)

    # Larger batch exercising the tiled (grid > 1, partial last tile) path.
    big_batch = 2000
    s2 = jax.random.normal(k_s2, (big_batch, state_dim), jnp.float32)
    a2 = jax.random.normal(k_a2, (big_batch, action_dim), jnp.float32)
    q2 = jax.block_until_ready(qnet_forward(s2, a2, w1, b1, w2, b2))
    ref2 = _reference(s2, a2, w1, b1, w2, b2)
    assert q2.shape == (big_batch, 1)
    assert jnp.allclose(q2, ref2, atol=1e-4, rtol=1e-4)

    print("KERNEL_OK")
</pallas_src>

<mosaic_0001>
module attributes {stable_mosaic.version = 11 : i64} {
  func.func @qnet_kernel(%arg0: i32, %arg1: memref<3x8xf32, #tpu.memory_space<vmem>>, %arg2: memref<2x8xf32, #tpu.memory_space<vmem>>, %arg3: memref<64x3xf32, #tpu.memory_space<vmem>>, %arg4: memref<64x2xf32, #tpu.memory_space<vmem>>, %arg5: memref<64x1xf32, #tpu.memory_space<vmem>>, %arg6: memref<64x1xf32, #tpu.memory_space<vmem>>, %arg7: memref<1xf32, #tpu.memory_space<smem>>, %arg8: memref<1x8xf32, #tpu.memory_space<vmem>>) attributes {dimension_semantics = [#tpu.dimension_semantics<parallel>], iteration_bounds = array<i64: 1>, scalar_prefetch = 0 : i64, scratch_operands = 0 : i64, tpu.core_type = #tpu.core_type<tc>, window_params = [{transform_indices = @transform_0, window_bounds = array<i64: 3, 8>}, {transform_indices = @transform_1, window_bounds = array<i64: 2, 8>}, {pipeline_mode = #tpu.pipeline_mode<synchronous>, transform_indices = @transform_2, window_bounds = array<i64: 64, 3>}, {pipeline_mode = #tpu.pipeline_mode<synchronous>, transform_indices = @transform_3, window_bounds = array<i64: 64, 2>}, {pipeline_mode = #tpu.pipeline_mode<synchronous>, transform_indices = @transform_4, window_bounds = array<i64: 64, 1>}, {pipeline_mode = #tpu.pipeline_mode<synchronous>, transform_indices = @transform_5, window_bounds = array<i64: 64, 1>}, {transform_indices = @transform_6, window_bounds = array<i64: 1>}, {transform_indices = @transform_7, window_bounds = array<i64: 1, 8>}]} {
    %c0 = arith.constant 0 : index
    %c0_0 = arith.constant 0 : index
    %0 = vector.load %arg3[%c0, %c0_0] : memref<64x3xf32, #tpu.memory_space<vmem>>, vector<64x3xf32>
    %c0_1 = arith.constant 0 : index
    %c0_2 = arith.constant 0 : index
    %1 = vector.load %arg1[%c0_1, %c0_2] : memref<3x8xf32, #tpu.memory_space<vmem>>, vector<3x8xf32>
    %cst = arith.constant dense<0.000000e+00> : vector<64x8xf32>
    %2 = tpu.matmul %0, %1, %cst {dimension_numbers = #tpu.dot_dimension_numbers<[1], [0], [0], [1], [0, 0, 1, 1], [], []>} : vector<64x3xf32>, vector<3x8xf32>, vector<64x8xf32> -> vector<64x8xf32>
    %c0_3 = arith.constant 0 : index
    %c0_4 = arith.constant 0 : index
    %3 = vector.load %arg4[%c0_3, %c0_4] : memref<64x2xf32, #tpu.memory_space<vmem>>, vector<64x2xf32>
    %c0_5 = arith.constant 0 : index
    %c0_6 = arith.constant 0 : index
    %4 = vector.load %arg2[%c0_5, %c0_6] : memref<2x8xf32, #tpu.memory_space<vmem>>, vector<2x8xf32>
    %cst_7 = arith.constant dense<0.000000e+00> : vector<64x8xf32>
    %5 = tpu.matmul %3, %4, %cst_7 {dimension_numbers = #tpu.dot_dimension_numbers<[1], [0], [0], [1], [0, 0, 1, 1], [], []>} : vector<64x2xf32>, vector<2x8xf32>, vector<64x8xf32> -> vector<64x8xf32>
    %6 = arith.addf %2, %5 : vector<64x8xf32>
    %c0_8 = arith.constant 0 : index
    %c0_9 = arith.constant 0 : index
    %7 = vector.load %arg5[%c0_8, %c0_9] : memref<64x1xf32, #tpu.memory_space<vmem>>, vector<64x1xf32>
    %8 = vector.broadcast %7 : vector<64x1xf32> to vector<64x8xf32>
    %9 = arith.addf %6, %8 : vector<64x8xf32>
    %cst_10 = arith.constant 0.000000e+00 : f32
    %10 = vector.broadcast %cst_10 : f32 to vector<64x8xf32>
    %11 = arith.maximumf %9, %10 : vector<64x8xf32>
    %c0_11 = arith.constant 0 : index
    %c0_12 = arith.constant 0 : index
    %12 = vector.load %arg6[%c0_11, %c0_12] : memref<64x1xf32, #tpu.memory_space<vmem>>, vector<64x1xf32>
    %13 = vector.broadcast %12 : vector<64x1xf32> to vector<64x8xf32>
    %14 = arith.mulf %11, %13 : vector<64x8xf32>
    %cst_13 = arith.constant dense<0.000000e+00> : vector<8xf32>
    %15 = vector.multi_reduction <add>, %14, %cst_13 [0] : vector<64x8xf32> to vector<8xf32>
    %16 = vector.shape_cast %15 : vector<8xf32> to vector<1x8xf32>
    %c0_14 = arith.constant 0 : index
    %17 = memref.load %arg7[%c0_14] : memref<1xf32, #tpu.memory_space<smem>>
    %18 = vector.broadcast %17 : f32 to vector<1x8xf32>
    %19 = arith.addf %16, %18 : vector<1x8xf32>
    %c0_15 = arith.constant 0 : index
    %c0_16 = arith.constant 0 : index
    %20 = vector.load %arg8[%c0_15, %c0_16] : memref<1x8xf32, #tpu.memory_space<vmem>>, vector<1x8xf32>
    tpu.vector_store %arg8[%c0_15, %c0_16], %19 {strides = array<i32>} : memref<1x8xf32, #tpu.memory_space<vmem>>, vector<1x8xf32>,
    return
  }
  func.func @transform_0(%arg0: i32) -> (i32, i32) {
    %c0_i32 = arith.constant 0 : i32
    %c0_i32_0 = arith.constant 0 : i32
    return %c0_i32, %arg0 : i32, i32
  }
  func.func @transform_1(%arg0: i32) -> (i32, i32) {
    %c0_i32 = arith.constant 0 : i32
    %c0_i32_0 = arith.constant 0 : i32
    return %c0_i32, %arg0 : i32, i32
  }
  func.func @transform_2(%arg0: i32) -> (i32, i32) {
    %c0_i32 = arith.constant 0 : i32
    %c0_i32_0 = arith.constant 0 : i32
    %c0_i32_1 = arith.constant 0 : i32
    return %c0_i32, %c0_i32_0 : i32, i32
  }
  func.func @transform_3(%arg0: i32) -> (i32, i32) {
    %c0_i32 = arith.constant 0 : i32
    %c0_i32_0 = arith.constant 0 : i32
    %c0_i32_1 = arith.constant 0 : i32
    return %c0_i32, %c0_i32_0 : i32, i32
  }
  func.func @transform_4(%arg0: i32) -> (i32, i32) {
    %c0_i32 = arith.constant 0 : i32
    %c0_i32_0 = arith.constant 0 : i32
    %c0_i32_1 = arith.constant 0 : i32
    return %c0_i32, %c0_i32_0 : i32, i32
  }
  func.func @transform_5(%arg0: i32) -> (i32, i32) {
    %c0_i32 = arith.constant 0 : i32
    %c0_i32_0 = arith.constant 0 : i32
    %c0_i32_1 = arith.constant 0 : i32
    return %c0_i32, %c0_i32_0 : i32, i32
  }
  func.func @transform_6(%arg0: i32) -> i32 {
    %c0_i32 = arith.constant 0 : i32
    %c0_i32_0 = arith.constant 0 : i32
    return %c0_i32 : i32
  }
  func.func @transform_7(%arg0: i32) -> (i32, i32) {
    %c0_i32 = arith.constant 0 : i32
    %c0_i32_0 = arith.constant 0 : i32
    return %c0_i32, %arg0 : i32, i32
  }
}

</mosaic_0001>

<bundles_post_ra>
// kernel: tpu_custom_call.1
= control target key start
LH: loop header
LB: loop body
LE: loop exit
PB: predicated region body
PF: predicated region fallthrough
CT: control target
= control target key end

     0   :  { %vm71_vm0 = vcmask 1041408   ;;  %vm205_vm1 = vcmask 1042432   ;;  %vm46_vm2 = vcmask 15360   ;;  %vm180_vm3 = vcmask 23552   ;;  %s739_s0 = inlined_call_operand.vmem [shape: f32[3,8], index: 0, kind: input, shape index: {}]   ;;  %s740_s1 = inlined_call_operand.vmem [shape: f32[2,8], index: 1, kind: input, shape index: {}]   ;;  %s741_s2 = inlined_call_operand.vmem [shape: f32[64,3], index: 2, kind: input, shape index: {}]   ;;  %s742_s3 = inlined_call_operand.vmem [shape: f32[64,2], index: 3, kind: input, shape index: {}]   ;;  %s743_s4 = inlined_call_operand.vmem [shape: f32[64,1], index: 4, kind: input, shape index: {}]   ;;  %s744_s5 = inlined_call_operand.vmem [shape: f32[64,1], index: 5, kind: input, shape index: {}]   ;;  %s745_s6 = inlined_call_operand.<no memory space> [shape: f32[1], index: 6, kind: input, shape index: {}]   ;;  %s746_s7 = inlined_call_operand.hbm [shape: f32[1,8], index: 7, kind: output, shape index: {}]  }
   0x1   :  { %v45_v0 = vld [vmem:[%s740_s1] sm:$0x3]  ;;  %v38_v4 = vld [vmem:[%s742_s3 + $0x8] sm:$0xff]  ;;  %v39_v6 = vld [vmem:[%s742_s3 + $0x10] sm:$0xff]  ;;  %v565_v12 = vmov 0  }
   0x2   :  { %v36_v1 = vld [vmem:[%s739_s0] sm:$0x7]  ;;  %511 = vmatprep.subr.msk.mxu0 %vm71_vm0, %v45_v0  ;;  %v29_v5 = vld [vmem:[%s741_s2 + $0x8] sm:$0xff]  ;;  %v30_v7 = vld [vmem:[%s741_s2 + $0x10] sm:$0xff]  ;;  %541 = vset.pattern.permute.xlu0 %v565_v12 }
   0x3   :  { %525 = vmatprep.subr.msk.mxu1 %vm205_vm1, %v36_v1  ;;  %v37_v2 = vld [vmem:[%s742_s3] sm:$0xff]  ;;  %512 = vmatpush3.msk.msra.mxu0 %vm71_vm0, %v45_v0  ;;  %v40_v8 = vld [vmem:[%s742_s3 + $0x18] sm:$0xff]  ;;  %v316_v14 = vld [vmem:[%s743_s4 + $0x10] sm:$0xff] }
   0x4   :  { %v28_v3 = vld [vmem:[%s741_s2] sm:$0xff]  ;;  %513 = vmatprep.mubr.msk.f32.mxu0 %vm46_vm2, %v37_v2  ;;  %526 = vmatpush3.msk.msra.mxu1 %vm205_vm1, %v36_v1  ;;  %v31_v9 = vld [vmem:[%s741_s2 + $0x18] sm:$0xff]  ;;  %v315_v15 = vld [vmem:[%s743_s4 + $0x8] sm:$0xff] }
   0x5   :  { %527 = vmatprep.mubr.msk.f32.mxu1 %vm180_vm3, %v28_v3  ;;  %514 = vmatmul.mubr.msk.f32.vlgmr.msra.gmra.mxu0 %vm46_vm2, %v38_v4  ;;  %v41_v10 = vld [vmem:[%s742_s3 + $0x20] sm:$0xff]  ;;  %v317_v16 = vld [vmem:[%s743_s4 + $0x18] sm:$0xff]  ;;  %v42_v17 = vld [vmem:[%s742_s3 + $0x28] sm:$0xff] }
   0x6   :  { %528 = vmatmul.mubr.msk.f32.vlgmr.msra.gmra.mxu1 %vm180_vm3, %v29_v5  ;;  %516 = vmatprep.mubr.msk.f32.mxu0 %vm46_vm2, %v39_v6  ;;  %v32_v11 = vld [vmem:[%s741_s2 + $0x20] sm:$0xff]  ;;  %v33_v18 = vld [vmem:[%s741_s2 + $0x28] sm:$0xff]  ;;  %v43_v19 = vld [vmem:[%s742_s3 + $0x30] sm:$0xff] }
   0x7   :  { %530 = vmatprep.mubr.msk.f32.mxu1 %vm180_vm3, %v30_v7  ;;  %v314_v13 = vld [vmem:[%s743_s4] sm:$0xff]  ;;  %542 = vset.pattern.permute.xlu1 %v565_v12  ;;  %v34_v20 = vld [vmem:[%s741_s2 + $0x30] sm:$0xff] }
   0x8   :  { %324 = vperm.xlu0 %541, %v314_v13   ;;  %334 = vperm.xlu1 %542, %v316_v14  }
   0x9   :  { %517 = vmatmul.mubr.msk.f32.gmra.mxu0 %vm46_vm2, %v40_v8 }
   0xa   :  { %531 = vmatmul.mubr.msk.f32.gmra.mxu1 %vm180_vm3, %v31_v9  ;;  %519 = vmatprep.mubr.msk.f32.mxu0 %vm46_vm2, %v41_v10 }
   0xb   :  { %533 = vmatprep.mubr.msk.f32.mxu1 %vm180_vm3, %v32_v11 }
   0xc   :  { %329 = vperm.xlu0 %541, %v315_v15   ;;  %339 = vperm.xlu1 %542, %v317_v16  }
   0xd   :  { %13 = vsyncpa [#allocation4], 0  ;;  %520 = vmatmul.mubr.msk.f32.gmra.mxu0 %vm46_vm2, %v42_v17  ;;  %v378_v21 = vld [vmem:[%s744_s5] sm:$0xff]  ;;  %v379_v22 = vld [vmem:[%s744_s5 + $0x8] sm:$0xff]  ;;  %vm434_vm4 = vcmask 64512   ;;  %s566_s15 = smov [#allocation3]  }
   0xe   :  { %534 = vmatmul.mubr.msk.f32.gmra.mxu1 %vm180_vm3, %v33_v18  ;;  %522 = vmatprep.mubr.msk.f32.mxu0 %vm46_vm2, %v43_v19  ;;  %v44_v23 = vld [vmem:[%s742_s3 + $0x38] sm:$0xff]  ;;  %v318_v25 = vld [vmem:[%s743_s4 + $0x20] sm:$0xff]  ;;  %v380_v26 = vld [vmem:[%s744_s5 + $0x10] sm:$0xff]  ;;  %s467_s16 = sshll.u32 %s566_s15, 4  ;;  %vm459_vm5 = vcmask 57344   ;;  %s468_s16 = int_to_ptr.vmem [resolvable:$true] %s467_s16 }
   0xf   :  { %536 = vmatprep.mubr.msk.f32.mxu1 %vm180_vm3, %v34_v20  ;;  %v35_v24 = vld [vmem:[%s741_s2 + $0x38] sm:$0xff]  ;;  %v319_v27 = vld [vmem:[%s743_s4 + $0x28] sm:$0xff]  ;;  %v320_v29 = vld [vmem:[%s743_s4 + $0x30] sm:$0xff]  ;;  %s543_s17 = scalar_lea.vmem %s468_s16, 16  ;;  %s547_s18 = scalar_lea.vmem %s468_s16, 32 }
  0x10   :  { %388 = vperm.xlu0 %541, %v378_v21   ;;  %393 = vperm.xlu1 %542, %v379_v22   ;;  %v381_v28 = vld [vmem:[%s744_s5 + $0x18] sm:$0xff]  ;;  %v382_v30 = vld [vmem:[%s744_s5 + $0x20] sm:$0xff]  ;;  %v383_v32 = vld [vmem:[%s744_s5 + $0x28] sm:$0xff]  ;;  %p544_p0 = scmp.ne.s32.totalorder %s468_s16, %s543_s17  ;;  %p548_p1 = scmp.lt.s32.totalorder %s468_s16, %s468_s16 }
  0x11   :  { %523 = vmatmul.mubr.msk.f32.gmra.mxu0 %vm46_vm2, %v44_v23  ;;  %v321_v31 = vld [vmem:[%s743_s4 + $0x38] sm:$0xff]  ;;  %v384_v33 = vld [vmem:[%s744_s5 + $0x30] sm:$0xff]  ;;  %p549_p2 = scmp.lt.s32.totalorder %s547_s18, %s543_s17 }
  0x12   :  { %537 = vmatmul.mubr.msk.f32.gmra.mxu1 %vm180_vm3, %v35_v24  ;;  %v385_v34 = vld [vmem:[%s744_s5 + $0x38] sm:$0xff] }
  0x13   :  { %p550_p3 = por %p549_p2, %p548_p1 }
  0x14   :  { %344 = vperm.xlu0 %541, %v318_v25   ;;  %398 = vperm.xlu1 %542, %v380_v26  }
  0x15   :  { %p551_p4 = pnand %p550_p3, %p544_p0 }
  0x18   :  { %349 = vperm.xlu0 %541, %v319_v27   ;;  %403 = vperm.xlu1 %542, %v381_v28  }
  0x1c   :  { %354 = vperm.xlu0 %541, %v320_v29   ;;  %408 = vperm.xlu1 %542, %v382_v30  }
  0x20   :  { %359 = vperm.xlu0 %541, %v321_v31   ;;  %413 = vperm.xlu1 %542, %v383_v32  }
  0x24   :  { %418 = vperm.xlu0 %541, %v384_v33   ;;  %423 = vperm.xlu1 %542, %v385_v34  }
  0x83   :  { %v325_v35 = vpop.permute.xlu0 %324  ;;  %v335_v36 = vpop.permute.xlu1 %334 }
  0x87   :  { %v330_v37 = vpop.permute.xlu0 %329  ;;  %v340_v38 = vpop.permute.xlu1 %339 }
  0x8b   :  { %v389_v39 = vpop.permute.xlu0 %388  ;;  %v394_v40 = vpop.permute.xlu1 %393 }
  0x8f   :  { %v345_v41 = vpop.permute.xlu0 %344  ;;  %v399_v42 = vpop.permute.xlu1 %398 }
  0x93   :  { %v350_v45 = vpop.permute.xlu0 %349  ;;  %v404_v46 = vpop.permute.xlu1 %403 }
  0x97   :  { %v355_v59 = vpop.permute.xlu0 %354  ;;  %v409_v60 = vpop.permute.xlu1 %408 }
  0x9b   :  { %v360_v16 = vpop.permute.xlu0 %359  ;;  %v414_v17 = vpop.permute.xlu1 %413 }
  0xc5   :  { %v515_v43 = vpop.f32.mrf.mxu0 }
  0xc6   :  { %v529_v44 = vpop.f32.mrf.mxu1 }
  0xc7   :  { %v281_v47 = vadd.f32 %v529_v44, %v515_v43  ;;  %v141_v48 = vpop.f32.mrf.mxu0 }
  0xc8   :  { %v275_v49 = vpop.f32.mrf.mxu1 }
  0xc9   :  { %v363_v50 = vadd.f32 %v330_v37, %v281_v47  ;;  %v276_v51 = vadd.f32 %v275_v49, %v141_v48  ;;  %v518_v52 = vpop.f32.mrf.mxu0 }
  0xca   :  { %v532_v53 = vpop.f32.mrf.mxu1 }
  0xcb   :  { %v371_v54 = vmax.f32 %v363_v50, 0.0  ;;  %v362_v55 = vadd.f32 %v325_v35, %v276_v51  ;;  %v291_v56 = vadd.f32 %v532_v53, %v518_v52  ;;  %v151_v57 = vpop.f32.mrf.mxu0 }
  0xcc   :  { %v285_v58 = vpop.f32.mrf.mxu1 }
  0xcd   :  { %v370_v61 = vmax.f32 %v362_v55, 0.0  ;;  %v365_v62 = vadd.f32 %v340_v38, %v291_v56  ;;  %v286_v63 = vadd.f32 %v285_v58, %v151_v57  ;;  %v521_v0 = vpop.f32.mrf.mxu0  ;;  %v427_v2 = vmul.f32 %v394_v40, %v371_v54  ;;  %v424_v40 = vpop.permute.xlu1 %423 }
  0xce   :  { %v535_v1 = vpop.f32.mrf.mxu1  ;;  %v457_v55 = vstv %s745_s6 }
  0xcf   :  { %v426_v3 = vmul.f32 %v389_v39, %v370_v61  ;;  %v373_v4 = vmax.f32 %v365_v62, 0.0  ;;  %v364_v5 = vadd.f32 %v335_v36, %v286_v63  ;;  %v301_v6 = vadd.f32 %v535_v1, %v521_v0  ;;  %v161_v7 = vpop.f32.mrf.mxu0  ;;  %v419_v39 = vpop.permute.xlu0 %418 }
  0xd0   :  { %v295_v8 = vpop.f32.mrf.mxu1  ;;  %v436_v18 = vsel %vm434_vm4, %v427_v2, 0.0 }
  0xd1   :  { %v435_v9 = vsel %vm434_vm4, %v426_v3, 0.0  ;;  %v372_v10 = vmax.f32 %v364_v5, 0.0  ;;  %v296_v11 = vadd.f32 %v295_v8, %v161_v7  ;;  %v429_v12 = vmul.f32 %v404_v46, %v373_v4  ;;  %v524_v14 = vpop.f32.mrf.mxu0 }
  0xd2   :  { %v367_v13 = vadd.f32 %v350_v45, %v301_v6  ;;  %v538_v15 = vpop.f32.mrf.mxu1  ;;  %v437_v22 = vadd.f32 %v436_v18, %v435_v9 }
  0xd3   :  { %v428_v19 = vmul.f32 %v399_v42, %v372_v10  ;;  %v366_v20 = vadd.f32 %v345_v41, %v296_v11  ;;  %v311_v21 = vadd.f32 %v538_v15, %v524_v14  ;;  %v171_v24 = vpop.f32.mrf.mxu0  ;;  %v440_v30 = vsel %vm434_vm4, %v429_v12, 0.0 }
  0xd4   :  { %v375_v23 = vmax.f32 %v367_v13, 0.0  ;;  %v305_v25 = vpop.f32.mrf.mxu1 }
  0xd5   :  { %v438_v26 = vsel %vm434_vm4, %v428_v19, 0.0  ;;  %v374_v27 = vmax.f32 %v366_v20, 0.0  ;;  %v369_v28 = vadd.f32 %v360_v16, %v311_v21  ;;  %v306_v29 = vadd.f32 %v305_v25, %v171_v24 }
  0xd6   :  { %v439_v31 = vadd.f32 %v438_v26, %v437_v22  ;;  %v431_v32 = vmul.f32 %v414_v17, %v375_v23 }
  0xd7   :  { %v430_v33 = vmul.f32 %v409_v60, %v374_v27  ;;  %v377_v34 = vmax.f32 %v369_v28, 0.0  ;;  %v368_v35 = vadd.f32 %v355_v59, %v306_v29 }
  0xd8   :  { %v441_v36 = vadd.f32 %v440_v30, %v439_v31  ;;  %v444_v42 = vsel %vm434_vm4, %v431_v32, 0.0 }
  0xd9   :  { %v442_v37 = vsel %vm434_vm4, %v430_v33, 0.0  ;;  %v376_v38 = vmax.f32 %v368_v35, 0.0  ;;  %v433_v43 = vmul.f32 %v424_v40, %v377_v34 }
  0xda   :  { %v443_v41 = vadd.f32 %v442_v37, %v441_v36 }
  0xdb   :  { %v432_v44 = vmul.f32 %v419_v39, %v376_v38  ;;  %v448_v48 = vsel %vm434_vm4, %v433_v43, 0.0 }
  0xdc   :  { %v445_v45 = vadd.f32 %v444_v42, %v443_v41 }
  0xdd   :  { %v446_v46 = vsel %vm434_vm4, %v432_v44, 0.0 }
  0xde   :  { %v447_v47 = vadd.f32 %v446_v46, %v445_v45 }
  0xe0   :  { %v449_v49 = vadd.f32 %v448_v48, %v447_v47 }
  0xe2   :  { %v450_v50 = vrot.slane %v449_v49, 4 }
  0xe4   :  { %v451_v51 = vadd.f32 %v450_v50, %v449_v49 }
  0xe6   :  { %v452_v52 = vrot.slane %v451_v51, 2 }
  0xe8   :  { %v453_v53 = vadd.f32 %v452_v52, %v451_v51 }
  0xea   :  { %v454_v54 = vrot.slane %v453_v53, 1 }
  0xec   :  { %v455_v56 = vadd.f32 %v454_v54, %v453_v53 }
  0xee   :  { %v458_v57 = vadd.f32 %v457_v55, %v455_v56 }
  0xf0   :  { %460 = vst.msk [vmem:[#allocation3] sm:$0x1] %vm459_vm5, %v458_v57 }
  0xf1   :  { %554 = shalt.err (!%p551_p4)
}
  0xf2   :  { %470 = dma.vmem_to_hbm [thread:$0]  %s468_s16, 16, %s746_s7, [#allocation4]  }
  0xf3   :  { %563 = dma.done.wait [#allocation4], 16  }
  0xf4   :  { %564 = vsyncadd [#allocation4], 4294967280 }
  0xf5   :  { %474 = vsyncpa [#allocation4], 1 }

</bundles_post_ra>
